<compile_context>
chip_gen: v6e
topology: v6e:2x2x1
jax: 0.10.0
libtpu: 0.0.40
codegen_flags: <defaults>
</compile_context>

<pallas_src>
import math
import functools

import jax
import jax.numpy as jnp
from jax import lax
from jax.experimental import pallas as pl
from jax.experimental.pallas import tpu as pltpu


# ---------------------------------------------------------------------------
# Per-chip budgets (review: re-budget VMEM / tiles per generation)
# ---------------------------------------------------------------------------
def _vmem_capacity_bytes():
    try:
        info = pltpu.get_tpu_info()
        cap = getattr(info, "vmem_capacity_bytes", None)
        if cap:
            return int(cap)
    except Exception:
        pass
    return 64 * 1024 * 1024  # conservative default (v7x per-TC size)


def _default_tiles_and_vmem():
    cap = _vmem_capacity_bytes()
    if cap >= 128 * 1024 * 1024:          # v5e / v6e: 128 MiB physical VMEM
        return 512, 512, 96 * 1024 * 1024
    return 256, 256, 48 * 1024 * 1024     # v7x: 64 MiB per TensorCore


def _round_up(x, m):
    return ((x + m - 1) // m) * m


def _pad_rows(x, target_len):
    if x.shape[1] == target_len:
        return x
    return jnp.pad(x, ((0, 0), (0, target_len - x.shape[1]), (0, 0)))


def _const_spec(shape, mode):
    """BlockSpec for an operand whose block index never changes (weights)."""
    index_map = lambda *_: (0,) * len(shape)
    if mode is None:
        return pl.BlockSpec(shape, index_map)
    return pl.BlockSpec(shape, index_map, pipeline_mode=mode)


# ---------------------------------------------------------------------------
# Kernel 1: K/V projection, head-major output (runs once per key position)
# ---------------------------------------------------------------------------
def _kv_proj_kernel(k_in_ref, v_in_ref, wk_ref, bk_ref, wv_ref, bv_ref,
                    kh_ref, vh_ref, *, num_heads, d_k, matmul_dtype):
    def split_heads(x2d):
        # Cast happened BEFORE this relayout; the relayout itself runs once per
        # key tile total (not per q-tile), so it is off the hot flash loop.
        return jnp.stack(
            [x2d[:, h * d_k:(h + 1) * d_k] for h in range(num_heads)], axis=0)

    x_k = k_in_ref[0].astype(matmul_dtype)                       # (tk, D)
    x_v = v_in_ref[0].astype(matmul_dtype)
    # Full-width (tk, D) @ (D, D) matmuls: full 256-wide MXU utilization
    # (a per-head (D, d_k) matmul would only use d_k < 128 output lanes).
    k2 = jnp.dot(x_k, wk_ref[...], preferred_element_type=jnp.float32)
    k2 = (k2 + bk_ref[...].astype(jnp.float32)).astype(matmul_dtype)
    v2 = jnp.dot(x_v, wv_ref[...], preferred_element_type=jnp.float32)
    v2 = (v2 + bv_ref[...].astype(jnp.float32)).astype(matmul_dtype)

    kh_ref[0] = split_heads(k2)                                  # (H, tk, d_k)
    vh_ref[0] = split_heads(v2)


def _project_kv(k_in, v_in, wk, bk, wv, bv, *, num_heads, d_k, tk,
                matmul_dtype, weight_mode, vmem_limit):
    B, sk_p, D = k_in.shape
    nk = sk_p // tk
    kernel = functools.partial(_kv_proj_kernel, num_heads=num_heads, d_k=d_k,
                               matmul_dtype=matmul_dtype)
    out_shape = jax.ShapeDtypeStruct((B, num_heads, sk_p, d_k), matmul_dtype)
    kv_in_spec = pl.BlockSpec((1, tk, D), lambda b, ki: (b, ki, 0))
    kvh_out_spec = pl.BlockSpec((1, num_heads, tk, d_k),
                                lambda b, ki: (b, 0, ki, 0))
    return pl.pallas_call(
        kernel,
        out_shape=(out_shape, out_shape),
        grid_spec=pltpu.PrefetchScalarGridSpec(
            num_scalar_prefetch=0,
            grid=(B, nk),
            in_specs=[
                kv_in_spec, kv_in_spec,
                _const_spec((D, D), weight_mode), _const_spec((1, D), weight_mode),
                _const_spec((D, D), weight_mode), _const_spec((1, D), weight_mode),
            ],
            out_specs=(kvh_out_spec, kvh_out_spec),
        ),
        compiler_params=pltpu.CompilerParams(
            dimension_semantics=("parallel", "parallel"),
            vmem_limit_bytes=vmem_limit),
    )(k_in, v_in, wk, bk, wv, bv)


# ---------------------------------------------------------------------------
# Kernel 2: flash-style attention + W_O + residual + LayerNorm
# ---------------------------------------------------------------------------
def _attn_kernel(q_in_ref, kh_ref, vh_ref,
                 wq_ref, bq_ref, wo_ref, bo_ref, gamma_ref, beta_ref,
                 out_ref,
                 qh_scr, m_scr, l_scr, acc_scr,
                 *, num_heads, d_k, sk_valid, block_k, needs_kmask, matmul_dtype):
    ki = pl.program_id(2)
    nk = pl.num_programs(2)

    # ---- once per (batch, q-tile): reset online-softmax state, project Q ----
    @pl.when(ki == 0)
    def _init():
        m_scr[...] = jnp.full(m_scr.shape, -jnp.inf, dtype=m_scr.dtype)
        l_scr[...] = jnp.zeros(l_scr.shape, dtype=l_scr.dtype)
        acc_scr[...] = jnp.zeros(acc_scr.shape, dtype=acc_scr.dtype)

        x_q = q_in_ref[0].astype(matmul_dtype)                   # (tq, D)
        q2 = jnp.dot(x_q, wq_ref[...], preferred_element_type=jnp.float32)
        # Fold the 1/sqrt(d_k) score scale into Q once per q-tile.
        q2 = (q2 + bq_ref[...].astype(jnp.float32)) * (1.0 / math.sqrt(d_k))
        q2 = q2.astype(qh_scr.dtype)                             # cast BEFORE relayout
        qh_scr[...] = jnp.stack(
            [q2[:, h * d_k:(h + 1) * d_k] for h in range(num_heads)], axis=0)

    # ---- every grid step: flash update with pre-projected, head-major K/V ----
    kh = kh_ref[0]                                               # (H, tk, d_k)
    vh = vh_ref[0]
    s = jnp.einsum('hqd,hkd->hqk', qh_scr[...], kh,
                   preferred_element_type=jnp.float32)           # (H, tq, tk) f32

    if needs_kmask:
        # Mask padded key rows (only traced when Sk % tk != 0).
        kpos = ki * block_k + lax.broadcasted_iota(jnp.int32, (1, 1, block_k), 2)
        s = jnp.where(kpos < sk_valid, s, -jnp.inf)

    m_prev = m_scr[...]
    m_new = jnp.maximum(m_prev, jnp.max(s, axis=-1, keepdims=True))
    alpha = jnp.exp(m_prev - m_new)
    p = jnp.exp(s - m_new)
    l_scr[...] = alpha * l_scr[...] + jnp.sum(p, axis=-1, keepdims=True)
    acc_scr[...] = alpha * acc_scr[...] + jnp.einsum(
        'hqk,hkd->hqd', p.astype(matmul_dtype), vh,
        preferred_element_type=jnp.float32)
    m_scr[...] = m_new

    # ---- last K step: normalize, combine heads, W_O, residual, LayerNorm ----
    @pl.when(ki == nk - 1)
    def _finalize():
        inv_l = pl.reciprocal(l_scr[...], approx=False)
        attn = (acc_scr[...] * inv_l).astype(matmul_dtype)       # cast before relayout
        # Lane concat (once per q-tile) then a full-width (tq,D)@(D,D) matmul:
        # cheaper/safer than a 2-contracting-dim einsum over (h, d).
        attn2d = jnp.concatenate(
            [attn[h] for h in range(num_heads)], axis=-1)        # (tq, D)

        proj = jnp.dot(attn2d, wo_ref[...], preferred_element_type=jnp.float32)
        proj = proj + bo_ref[...].astype(jnp.float32)
        y = q_in_ref[0].astype(jnp.float32) + proj               # residual, f32

        mean = jnp.mean(y, axis=-1, keepdims=True)
        var = jnp.mean(jnp.square(y - mean), axis=-1, keepdims=True)
        normed = (y - mean) * lax.rsqrt(var + 1e-5)
        out_ref[0] = (normed * gamma_ref[...].astype(jnp.float32)
                      + beta_ref[...].astype(jnp.float32)).astype(out_ref.dtype)


def _attention(q_in, kh, vh, wq, bq, wo, bo, gamma, beta, *, num_heads, d_k,
               tq, tk, sk_valid, matmul_dtype, weight_mode, vmem_limit, out_dtype):
    B, sq_p, D = q_in.shape
    sk_p = kh.shape[2]
    grid = (B, sq_p // tq, sk_p // tk)
    needs_kmask = (sk_p != sk_valid)

    kernel = functools.partial(
        _attn_kernel, num_heads=num_heads, d_k=d_k, sk_valid=sk_valid,
        block_k=tk, needs_kmask=needs_kmask, matmul_dtype=matmul_dtype)

    q_spec = pl.BlockSpec((1, tq, D), lambda b, qi, ki: (b, qi, 0))
    # TODO(synk): pl.Buffered(3) here if the (now cheap) per-step compute no
    #             longer covers the K/V tile fetch.
    kv_spec = pl.BlockSpec((1, num_heads, tk, d_k), lambda b, qi, ki: (b, 0, ki, 0))
    out_spec = pl.BlockSpec((1, tq, D), lambda b, qi, ki: (b, qi, 0))

    return pl.pallas_call(
        kernel,
        out_shape=jax.ShapeDtypeStruct((B, sq_p, D), out_dtype),
        grid_spec=pltpu.PrefetchScalarGridSpec(
            num_scalar_prefetch=0,
            grid=grid,
            in_specs=[
                q_spec, kv_spec, kv_spec,
                _const_spec((D, D), weight_mode), _const_spec((1, D), weight_mode),
                _const_spec((D, D), weight_mode), _const_spec((1, D), weight_mode),
                _const_spec((1, D), weight_mode), _const_spec((1, D), weight_mode),
            ],
            out_specs=out_spec,
            scratch_shapes=[
                pltpu.VMEM((num_heads, tq, d_k), matmul_dtype),  # scaled Q (head-major)
                pltpu.VMEM((num_heads, tq, 1), jnp.float32),     # running max (pads to 128 lanes)
                pltpu.VMEM((num_heads, tq, 1), jnp.float32),     # running denom (pads to 128 lanes)
                pltpu.VMEM((num_heads, tq, d_k), jnp.float32),   # output accumulator
            ],
        ),
        compiler_params=pltpu.CompilerParams(
            dimension_semantics=("parallel", "parallel", "arbitrary"),
            vmem_limit_bytes=vmem_limit),
    )(q_in, kh, vh, wq, bq, wo, bo, gamma, beta)


# ---------------------------------------------------------------------------
# Public wrapper
# ---------------------------------------------------------------------------
def _mhca_impl(q_input, k_input, v_input, params, *, num_heads, tq_max, tk_max,
               matmul_dtype, weight_mode):
    B, Sq, D = q_input.shape
    _, Sk, _ = k_input.shape
    assert D % num_heads == 0
    d_k = D // num_heads

    tq_def, tk_def, vmem_limit = _default_tiles_and_vmem()
    tq_max = tq_def if tq_max is None else tq_max
    tk_max = tk_def if tk_max is None else tk_max
    if matmul_dtype is None:
        matmul_dtype = q_input.dtype
    matmul_dtype = jnp.dtype(matmul_dtype)

    wq, bq, wk, bk, wv, bv, wo, bo, gamma, beta = params
    # Cast matmul weights once in the wrapper (no per-step cast; halves weight
    # DMA + VMEM when matmul_dtype is bf16).
    wq, wk, wv, wo = tuple(w.astype(matmul_dtype) for w in (wq, wk, wv, wo))

    # ---- query tiling ----
    tq = Sq if Sq <= tq_max else tq_max
    # v7x has 2 TensorCores fed via the "parallel" grid axes: if there is only
    # one (batch, q-tile) work unit, split the query axis so both cores get work.
    if B == 1 and Sq <= tq_max and Sq >= 16:
        tq = _round_up(-(-Sq // 2), 8)
    sq_p = _round_up(Sq, tq)

    # ---- key tiling ----
    tk = Sk if Sk <= tk_max else tk_max
    sk_p = _round_up(Sk, tk)

    q_p = _pad_rows(q_input, sq_p)
    k_p = _pad_rows(k_input, sk_p)
    v_p = _pad_rows(v_input, sk_p)

    # Hoisted K/V projection: once per key position (not once per q-tile).
    kh, vh = _project_kv(k_p, v_p, wk, bk, wv, bv, num_heads=num_heads, d_k=d_k,
                         tk=tk, matmul_dtype=matmul_dtype,
                         weight_mode=weight_mode, vmem_limit=vmem_limit)

    out = _attention(q_p, kh, vh, wq, bq, wo, bo, gamma, beta,
                     num_heads=num_heads, d_k=d_k, tq=tq, tk=tk, sk_valid=Sk,
                     matmul_dtype=matmul_dtype, weight_mode=weight_mode,
                     vmem_limit=vmem_limit, out_dtype=q_input.dtype)

    return out[:, :Sq, :] if sq_p != Sq else out


def multi_head_cross_attention(q_input, k_input, v_input, params, *, num_heads,
                               tq_max=None, tk_max=None, matmul_dtype=None):
    """q_input: (B, Sq, D); k_input/v_input: (B, Sk, D). Returns (B, Sq, D)."""
    try:
        # Preferred path: constant weights are single-buffered (VMEM savings).
        return _mhca_impl(q_input, k_input, v_input, params, num_heads=num_heads,
                          tq_max=tq_max, tk_max=tk_max, matmul_dtype=matmul_dtype,
                          weight_mode=pl.Buffered(1))
    except Exception:
        # Fallback if this jax build rejects single-buffered BlockSpecs.
        return _mhca_impl(q_input, k_input, v_input, params, num_heads=num_heads,
                          tq_max=tq_max, tk_max=tk_max, matmul_dtype=matmul_dtype,
                          weight_mode=None)


# ---------------------------------------------------------------------------
# Pure-JAX reference (mirrors the PyTorch forward pass) + test harness
# ---------------------------------------------------------------------------
def _reference(q_input, k_input, v_input, params, *, num_heads):
    wq, bq, wk, bk, wv, bv, wo, bo, gamma, beta = params
    B, Sq, D = q_input.shape
    _, Sk, _ = k_input.shape
    d_k = D // num_heads

    Q = q_input @ wq + bq[0]
    K = k_input @ wk + bk[0]
    V = v_input @ wv + bv[0]

    def split(x, S):
        return x.reshape(B, S, num_heads, d_k).transpose(0, 2, 1, 3)

    Qh, Kh, Vh = split(Q, Sq), split(K, Sk), split(V, Sk)
    scores = jnp.einsum('bhqd,bhkd->bhqk', Qh, Kh) / math.sqrt(d_k)
    attn = jax.nn.softmax(scores, axis=-1)
    out = jnp.einsum('bhqk,bhkd->bhqd', attn, Vh)
    out = out.transpose(0, 2, 1, 3).reshape(B, Sq, D)
    out = out @ wo + bo[0]
    y = q_input + out
    mean = jnp.mean(y, axis=-1, keepdims=True)
    var = jnp.mean((y - mean) ** 2, axis=-1, keepdims=True)
    return (y - mean) / jnp.sqrt(var + 1e-5) * gamma[0] + beta[0]


def _make_params(key, d_model):
    keys = jax.random.split(key, 8)
    scale = 1.0 / math.sqrt(d_model)
    wq = jax.random.normal(keys[0], (d_model, d_model), jnp.float32) * scale
    bq = jax.random.normal(keys[1], (1, d_model), jnp.float32) * 0.1
    wk = jax.random.normal(keys[2], (d_model, d_model), jnp.float32) * scale
    bk = jax.random.normal(keys[3], (1, d_model), jnp.float32) * 0.1
    wv = jax.random.normal(keys[4], (d_model, d_model), jnp.float32) * scale
    bv = jax.random.normal(keys[5], (1, d_model), jnp.float32) * 0.1
    wo = jax.random.normal(keys[6], (d_model, d_model), jnp.float32) * scale
    bo = jax.random.normal(keys[7], (1, d_model), jnp.float32) * 0.1
    gamma = jnp.ones((1, d_model), jnp.float32)
    beta = jnp.zeros((1, d_model), jnp.float32)
    return (wq, bq, wk, bk, wv, bv, wo, bo, gamma, beta)


if __name__ == "__main__":
    d_model, num_heads = 32, 4
    key = jax.random.PRNGKey(0)
    key_par, key_t1, key_t2, key_t3 = jax.random.split(key, 4)
    params = _make_params(key_par, d_model)

    # --- test 1: single q/k tile per batch (small shapes, f32 exact path) ---
    B1, Sq1, Sk1 = 2, 8, 16
    kk = jax.random.split(key_t1, 3)
    q1 = jax.random.normal(kk[0], (B1, Sq1, d_model), jnp.float32)
    k1 = jax.random.normal(kk[1], (B1, Sk1, d_model), jnp.float32)
    v1 = jax.random.normal(kk[2], (B1, Sk1, d_model), jnp.float32)

    out1 = jax.block_until_ready(
        multi_head_cross_attention(q1, k1, v1, params, num_heads=num_heads))
    ref1 = _reference(q1, k1, v1, params, num_heads=num_heads)
    assert out1.shape == (B1, Sq1, d_model)
    assert jnp.allclose(out1, ref1, atol=2e-4, rtol=2e-4), \
        f"test1 max abs err = {jnp.max(jnp.abs(out1 - ref1))}"

    # --- test 2: multiple q-tiles + streamed/masked K tiles (ragged Sk) ---
    B2, Sq2, Sk2 = 2, 12, 20
    kk2 = jax.random.split(key_t2, 3)
    q2 = jax.random.normal(kk2[0], (B2, Sq2, d_model), jnp.float32)
    k2 = jax.random.normal(kk2[1], (B2, Sk2, d_model), jnp.float32)
    v2 = jax.random.normal(kk2[2], (B2, Sk2, d_model), jnp.float32)

    out2 = jax.block_until_ready(
        multi_head_cross_attention(q2, k2, v2, params, num_heads=num_heads,
                                   tq_max=8, tk_max=8))
    ref2 = _reference(q2, k2, v2, params, num_heads=num_heads)
    assert out2.shape == (B2, Sq2, d_model)
    assert jnp.allclose(out2, ref2, atol=2e-4, rtol=2e-4), \
        f"test2 max abs err = {jnp.max(jnp.abs(out2 - ref2))}"

    # --- test 3: B=1 (forced 2 q-tiles for v7x megacore) + bf16 MXU operands ---
    B3, Sq3, Sk3 = 1, 24, 16
    kk3 = jax.random.split(key_t3, 3)
    q3 = jax.random.normal(kk3[0], (B3, Sq3, d_model), jnp.float32)
    k3 = jax.random.normal(kk3[1], (B3, Sk3, d_model), jnp.float32)
    v3 = jax.random.normal(kk3[2], (B3, Sk3, d_model), jnp.float32)

    out3 = jax.block_until_ready(
        multi_head_cross_attention(q3, k3, v3, params, num_heads=num_heads,
                                   matmul_dtype=jnp.bfloat16))
    ref3 = _reference(q3, k3, v3, params, num_heads=num_heads)
    assert out3.shape == (B3, Sq3, d_model)
    assert bool(jnp.all(jnp.isfinite(out3)))
    # bf16 matmul operands -> loose tolerance vs the f32 reference.
    assert jnp.allclose(out3, ref3, atol=0.15, rtol=0.05), \
        f"test3 max abs err = {jnp.max(jnp.abs(out3 - ref3))}"

    print("KERNEL_OK")
</pallas_src>

<mosaic_0001>
module attributes {stable_mosaic.version = 11 : i64} {
  func.func @_kv_proj_kernel(%arg0: i32, %arg1: i32, %arg2: memref<1x16x32xf32, #tpu.memory_space<vmem>>, %arg3: memref<1x16x32xf32, #tpu.memory_space<vmem>>, %arg4: memref<32x32xf32, #tpu.memory_space<vmem>>, %arg5: memref<1x32xf32, #tpu.memory_space<vmem>>, %arg6: memref<32x32xf32, #tpu.memory_space<vmem>>, %arg7: memref<1x32xf32, #tpu.memory_space<vmem>>, %arg8: memref<1x4x16x8xf32, #tpu.memory_space<vmem>>, %arg9: memref<1x4x16x8xf32, #tpu.memory_space<vmem>>) attributes {dimension_semantics = [#tpu.dimension_semantics<parallel>, #tpu.dimension_semantics<parallel>], iteration_bounds = array<i64: 2, 1>, scalar_prefetch = 0 : i64, scratch_operands = 0 : i64, tpu.core_type = #tpu.core_type<tc>, window_params = [{transform_indices = @transform_0, window_bounds = array<i64: 1, 16, 32>}, {transform_indices = @transform_1, window_bounds = array<i64: 1, 16, 32>}, {pipeline_mode = #tpu.pipeline_mode<synchronous>, transform_indices = @transform_2, window_bounds = array<i64: 32, 32>}, {pipeline_mode = #tpu.pipeline_mode<synchronous>, transform_indices = @transform_3, window_bounds = array<i64: 1, 32>}, {pipeline_mode = #tpu.pipeline_mode<synchronous>, transform_indices = @transform_4, window_bounds = array<i64: 32, 32>}, {pipeline_mode = #tpu.pipeline_mode<synchronous>, transform_indices = @transform_5, window_bounds = array<i64: 1, 32>}, {transform_indices = @transform_6, window_bounds = array<i64: 1, 4, 16, 8>}, {transform_indices = @transform_7, window_bounds = array<i64: 1, 4, 16, 8>}]} {
    %c0 = arith.constant 0 : index
    %c0_0 = arith.constant 0 : index
    %c0_1 = arith.constant 0 : index
    %0 = vector.load %arg2[%c0, %c0_0, %c0_1] : memref<1x16x32xf32, #tpu.memory_space<vmem>>, vector<1x16x32xf32>
    %1 = vector.shape_cast %0 : vector<1x16x32xf32> to vector<16x32xf32>
    %c0_2 = arith.constant 0 : index
    %c0_3 = arith.constant 0 : index
    %c0_4 = arith.constant 0 : index
    %2 = vector.load %arg3[%c0_2, %c0_3, %c0_4] : memref<1x16x32xf32, #tpu.memory_space<vmem>>, vector<1x16x32xf32>
    %3 = vector.shape_cast %2 : vector<1x16x32xf32> to vector<16x32xf32>
    %c0_5 = arith.constant 0 : index
    %c0_6 = arith.constant 0 : index
    %4 = vector.load %arg4[%c0_5, %c0_6] : memref<32x32xf32, #tpu.memory_space<vmem>>, vector<32x32xf32>
    %cst = arith.constant dense<0.000000e+00> : vector<16x32xf32>
    %5 = tpu.matmul %1, %4, %cst {dimension_numbers = #tpu.dot_dimension_numbers<[1], [0], [0], [1], [0, 0, 1, 1], [], []>} : vector<16x32xf32>, vector<32x32xf32>, vector<16x32xf32> -> vector<16x32xf32>
    %c0_7 = arith.constant 0 : index
    %c0_8 = arith.constant 0 : index
    %6 = vector.load %arg5[%c0_7, %c0_8] : memref<1x32xf32, #tpu.memory_space<vmem>>, vector<1x32xf32>
    %7 = vector.broadcast %6 : vector<1x32xf32> to vector<16x32xf32>
    %8 = arith.addf %5, %7 : vector<16x32xf32>
    %c0_9 = arith.constant 0 : index
    %c0_10 = arith.constant 0 : index
    %9 = vector.load %arg6[%c0_9, %c0_10] : memref<32x32xf32, #tpu.memory_space<vmem>>, vector<32x32xf32>
    %cst_11 = arith.constant dense<0.000000e+00> : vector<16x32xf32>
    %10 = tpu.matmul %3, %9, %cst_11 {dimension_numbers = #tpu.dot_dimension_numbers<[1], [0], [0], [1], [0, 0, 1, 1], [], []>} : vector<16x32xf32>, vector<32x32xf32>, vector<16x32xf32> -> vector<16x32xf32>
    %c0_12 = arith.constant 0 : index
    %c0_13 = arith.constant 0 : index
    %11 = vector.load %arg7[%c0_12, %c0_13] : memref<1x32xf32, #tpu.memory_space<vmem>>, vector<1x32xf32>
    %12 = vector.broadcast %11 : vector<1x32xf32> to vector<16x32xf32>
    %13 = arith.addf %10, %12 : vector<16x32xf32>
    %14 = vector.extract_strided_slice %8 {offsets = [0, 0], sizes = [16, 8], strides = [1, 1]} : vector<16x32xf32> to vector<16x8xf32>
    %15 = vector.extract_strided_slice %8 {offsets = [0, 8], sizes = [16, 8], strides = [1, 1]} : vector<16x32xf32> to vector<16x8xf32>
    %16 = vector.extract_strided_slice %8 {offsets = [0, 16], sizes = [16, 8], strides = [1, 1]} : vector<16x32xf32> to vector<16x8xf32>
    %17 = vector.extract_strided_slice %8 {offsets = [0, 24], sizes = [16, 8], strides = [1, 1]} : vector<16x32xf32> to vector<16x8xf32>
    %18 = vector.shape_cast %14 : vector<16x8xf32> to vector<1x16x8xf32>
    %19 = vector.shape_cast %15 : vector<16x8xf32> to vector<1x16x8xf32>
    %20 = vector.shape_cast %16 : vector<16x8xf32> to vector<1x16x8xf32>
    %21 = vector.shape_cast %17 : vector<16x8xf32> to vector<1x16x8xf32>
    %22 = tpu.concatenate %18, %19, %20, %21 in 0 : vector<1x16x8xf32>, vector<1x16x8xf32>, vector<1x16x8xf32>, vector<1x16x8xf32> -> vector<4x16x8xf32>
    %c0_14 = arith.constant 0 : index
    %c0_15 = arith.constant 0 : index
    %c0_16 = arith.constant 0 : index
    %c0_17 = arith.constant 0 : index
    %23 = vector.load %arg8[%c0_14, %c0_15, %c0_16, %c0_17] : memref<1x4x16x8xf32, #tpu.memory_space<vmem>>, vector<1x4x16x8xf32>
    %24 = vector.shape_cast %23 : vector<1x4x16x8xf32> to vector<4x16x8xf32>
    %25 = vector.shape_cast %22 : vector<4x16x8xf32> to vector<1x4x16x8xf32>
    tpu.vector_store %arg8[%c0_14, %c0_15, %c0_16, %c0_17], %25 {strides = array<i32>} : memref<1x4x16x8xf32, #tpu.memory_space<vmem>>, vector<1x4x16x8xf32>,
    %26 = vector.extract_strided_slice %13 {offsets = [0, 0], sizes = [16, 8], strides = [1, 1]} : vector<16x32xf32> to vector<16x8xf32>
    %27 = vector.extract_strided_slice %13 {offsets = [0, 8], sizes = [16, 8], strides = [1, 1]} : vector<16x32xf32> to vector<16x8xf32>
    %28 = vector.extract_strided_slice %13 {offsets = [0, 16], sizes = [16, 8], strides = [1, 1]} : vector<16x32xf32> to vector<16x8xf32>
    %29 = vector.extract_strided_slice %13 {offsets = [0, 24], sizes = [16, 8], strides = [1, 1]} : vector<16x32xf32> to vector<16x8xf32>
    %30 = vector.shape_cast %26 : vector<16x8xf32> to vector<1x16x8xf32>
    %31 = vector.shape_cast %27 : vector<16x8xf32> to vector<1x16x8xf32>
    %32 = vector.shape_cast %28 : vector<16x8xf32> to vector<1x16x8xf32>
    %33 = vector.shape_cast %29 : vector<16x8xf32> to vector<1x16x8xf32>
    %34 = tpu.concatenate %30, %31, %32, %33 in 0 : vector<1x16x8xf32>, vector<1x16x8xf32>, vector<1x16x8xf32>, vector<1x16x8xf32> -> vector<4x16x8xf32>
    %c0_18 = arith.constant 0 : index
    %c0_19 = arith.constant 0 : index
    %c0_20 = arith.constant 0 : index
    %c0_21 = arith.constant 0 : index
    %35 = vector.load %arg9[%c0_18, %c0_19, %c0_20, %c0_21] : memref<1x4x16x8xf32, #tpu.memory_space<vmem>>, vector<1x4x16x8xf32>
    %36 = vector.shape_cast %35 : vector<1x4x16x8xf32> to vector<4x16x8xf32>
    %37 = vector.shape_cast %34 : vector<4x16x8xf32> to vector<1x4x16x8xf32>
    tpu.vector_store %arg9[%c0_18, %c0_19, %c0_20, %c0_21], %37 {strides = array<i32>} : memref<1x4x16x8xf32, #tpu.memory_space<vmem>>, vector<1x4x16x8xf32>,
    return
  }
  func.func @transform_0(%arg0: i32, %arg1: i32) -> (i32, i32, i32) {
    %c0_i32 = arith.constant 0 : i32
    %c0_i32_0 = arith.constant 0 : i32
    return %arg0, %arg1, %c0_i32 : i32, i32, i32
  }
  func.func @transform_1(%arg0: i32, %arg1: i32) -> (i32, i32, i32) {
    %c0_i32 = arith.constant 0 : i32
    %c0_i32_0 = arith.constant 0 : i32
    return %arg0, %arg1, %c0_i32 : i32, i32, i32
  }
  func.func @transform_2(%arg0: i32, %arg1: i32) -> (i32, i32) {
    %c0_i32 = arith.constant 0 : i32
    %c0_i32_0 = arith.constant 0 : i32
    %c0_i32_1 = arith.constant 0 : i32
    return %c0_i32, %c0_i32_0 : i32, i32
  }
  func.func @transform_3(%arg0: i32, %arg1: i32) -> (i32, i32) {
    %c0_i32 = arith.constant 0 : i32
    %c0_i32_0 = arith.constant 0 : i32
    %c0_i32_1 = arith.constant 0 : i32
    return %c0_i32, %c0_i32_0 : i32, i32
  }
  func.func @transform_4(%arg0: i32, %arg1: i32) -> (i32, i32) {
    %c0_i32 = arith.constant 0 : i32
    %c0_i32_0 = arith.constant 0 : i32
    %c0_i32_1 = arith.constant 0 : i32
    return %c0_i32, %c0_i32_0 : i32, i32
  }
  func.func @transform_5(%arg0: i32, %arg1: i32) -> (i32, i32) {
    %c0_i32 = arith.constant 0 : i32
    %c0_i32_0 = arith.constant 0 : i32
    %c0_i32_1 = arith.constant 0 : i32
    return %c0_i32, %c0_i32_0 : i32, i32
  }
  func.func @transform_6(%arg0: i32, %arg1: i32) -> (i32, i32, i32, i32) {
    %c0_i32 = arith.constant 0 : i32
    %c0_i32_0 = arith.constant 0 : i32
    %c0_i32_1 = arith.constant 0 : i32
    return %arg0, %c0_i32, %arg1, %c0_i32_0 : i32, i32, i32, i32
  }
  func.func @transform_7(%arg0: i32, %arg1: i32) -> (i32, i32, i32, i32) {
    %c0_i32 = arith.constant 0 : i32
    %c0_i32_0 = arith.constant 0 : i32
    %c0_i32_1 = arith.constant 0 : i32
    return %arg0, %c0_i32, %arg1, %c0_i32_0 : i32, i32, i32, i32
  }
}

module attributes {stable_mosaic.version = 11 : i64} {
  func.func @_kv_proj_kernel(%arg0: i32, %arg1: i32, %arg2: memref<1x16x32xf32, #tpu.memory_space<vmem>>, %arg3: memref<1x16x32xf32, #tpu.memory_space<vmem>>, %arg4: memref<32x32xf32, #tpu.memory_space<vmem>>, %arg5: memref<1x32xf32, #tpu.memory_space<vmem>>, %arg6: memref<32x32xf32, #tpu.memory_space<vmem>>, %arg7: memref<1x32xf32, #tpu.memory_space<vmem>>, %arg8: memref<1x4x16x8xf32, #tpu.memory_space<vmem>>, %arg9: memref<1x4x16x8xf32, #tpu.memory_space<vmem>>) attributes {dimension_semantics = [#tpu.dimension_semantics<parallel>, #tpu.dimension_semantics<parallel>], iteration_bounds = array<i64: 2, 1>, scalar_prefetch = 0 : i64, scratch_operands = 0 : i64, tpu.core_type = #tpu.core_type<tc>, window_params = [{transform_indices = @transform_0, window_bounds = array<i64: 1, 16, 32>}, {transform_indices = @transform_1, window_bounds = array<i64: 1, 16, 32>}, {pipeline_mode = #tpu.pipeline_mode<synchronous>, transform_indices = @transform_2, window_bounds = array<i64: 32, 32>}, {pipeline_mode = #tpu.pipeline_mode<synchronous>, transform_indices = @transform_3, window_bounds = array<i64: 1, 32>}, {pipeline_mode = #tpu.pipeline_mode<synchronous>, transform_indices = @transform_4, window_bounds = array<i64: 32, 32>}, {pipeline_mode = #tpu.pipeline_mode<synchronous>, transform_indices = @transform_5, window_bounds = array<i64: 1, 32>}, {transform_indices = @transform_6, window_bounds = array<i64: 1, 4, 16, 8>}, {transform_indices = @transform_7, window_bounds = array<i64: 1, 4, 16, 8>}]} {
    %c0 = arith.constant 0 : index
    %c0_0 = arith.constant 0 : index
    %c0_1 = arith.constant 0 : index
    %0 = vector.load %arg2[%c0, %c0_0, %c0_1] : memref<1x16x32xf32, #tpu.memory_space<vmem>>, vector<1x16x32xf32>
    %1 = vector.shape_cast %0 : vector<1x16x32xf32> to vector<16x32xf32>
    %c0_2 = arith.constant 0 : index
    %c0_3 = arith.constant 0 : index
    %c0_4 = arith.constant 0 : index
    %2 = vector.load %arg3[%c0_2, %c0_3, %c0_4] : memref<1x16x32xf32, #tpu.memory_space<vmem>>, vector<1x16x32xf32>
    %3 = vector.shape_cast %2 : vector<1x16x32xf32> to vector<16x32xf32>
    %c0_5 = arith.constant 0 : index
    %c0_6 = arith.constant 0 : index
    %4 = vector.load %arg4[%c0_5, %c0_6] : memref<32x32xf32, #tpu.memory_space<vmem>>, vector<32x32xf32>
    %cst = arith.constant dense<0.000000e+00> : vector<16x32xf32>
    %5 = tpu.matmul %1, %4, %cst {dimension_numbers = #tpu.dot_dimension_numbers<[1], [0], [0], [1], [0, 0, 1, 1], [], []>} : vector<16x32xf32>, vector<32x32xf32>, vector<16x32xf32> -> vector<16x32xf32>
    %c0_7 = arith.constant 0 : index
    %c0_8 = arith.constant 0 : index
    %6 = vector.load %arg5[%c0_7, %c0_8] : memref<1x32xf32, #tpu.memory_space<vmem>>, vector<1x32xf32>
    %7 = vector.broadcast %6 : vector<1x32xf32> to vector<16x32xf32>
    %8 = arith.addf %5, %7 : vector<16x32xf32>
    %c0_9 = arith.constant 0 : index
    %c0_10 = arith.constant 0 : index
    %9 = vector.load %arg6[%c0_9, %c0_10] : memref<32x32xf32, #tpu.memory_space<vmem>>, vector<32x32xf32>
    %cst_11 = arith.constant dense<0.000000e+00> : vector<16x32xf32>
    %10 = tpu.matmul %3, %9, %cst_11 {dimension_numbers = #tpu.dot_dimension_numbers<[1], [0], [0], [1], [0, 0, 1, 1], [], []>} : vector<16x32xf32>, vector<32x32xf32>, vector<16x32xf32> -> vector<16x32xf32>
    %c0_12 = arith.constant 0 : index
    %c0_13 = arith.constant 0 : index
    %11 = vector.load %arg7[%c0_12, %c0_13] : memref<1x32xf32, #tpu.memory_space<vmem>>, vector<1x32xf32>
    %12 = vector.broadcast %11 : vector<1x32xf32> to vector<16x32xf32>
    %13 = arith.addf %10, %12 : vector<16x32xf32>
    %14 = vector.extract_strided_slice %8 {offsets = [0, 0], sizes = [16, 8], strides = [1, 1]} : vector<16x32xf32> to vector<16x8xf32>
    %15 = vector.extract_strided_slice %8 {offsets = [0, 8], sizes = [16, 8], strides = [1, 1]} : vector<16x32xf32> to vector<16x8xf32>
    %16 = vector.extract_strided_slice %8 {offsets = [0, 16], sizes = [16, 8], strides = [1, 1]} : vector<16x32xf32> to vector<16x8xf32>
    %17 = vector.extract_strided_slice %8 {offsets = [0, 24], sizes = [16, 8], strides = [1, 1]} : vector<16x32xf32> to vector<16x8xf32>
    %18 = vector.shape_cast %14 : vector<16x8xf32> to vector<1x16x8xf32>
    %19 = vector.shape_cast %15 : vector<16x8xf32> to vector<1x16x8xf32>
    %20 = vector.shape_cast %16 : vector<16x8xf32> to vector<1x16x8xf32>
    %21 = vector.shape_cast %17 : vector<16x8xf32> to vector<1x16x8xf32>
    %22 = tpu.concatenate %18, %19, %20, %21 in 0 : vector<1x16x8xf32>, vector<1x16x8xf32>, vector<1x16x8xf32>, vector<1x16x8xf32> -> vector<4x16x8xf32>
    %c0_14 = arith.constant 0 : index
    %c0_15 = arith.constant 0 : index
    %c0_16 = arith.constant 0 : index
    %c0_17 = arith.constant 0 : index
    %23 = vector.load %arg8[%c0_14, %c0_15, %c0_16, %c0_17] : memref<1x4x16x8xf32, #tpu.memory_space<vmem>>, vector<1x4x16x8xf32>
    %24 = vector.shape_cast %23 : vector<1x4x16x8xf32> to vector<4x16x8xf32>
    %25 = vector.shape_cast %22 : vector<4x16x8xf32> to vector<1x4x16x8xf32>
    tpu.vector_store %arg8[%c0_14, %c0_15, %c0_16, %c0_17], %25 {strides = array<i32>} : memref<1x4x16x8xf32, #tpu.memory_space<vmem>>, vector<1x4x16x8xf32>,
    %26 = vector.extract_strided_slice %13 {offsets = [0, 0], sizes = [16, 8], strides = [1, 1]} : vector<16x32xf32> to vector<16x8xf32>
    %27 = vector.extract_strided_slice %13 {offsets = [0, 8], sizes = [16, 8], strides = [1, 1]} : vector<16x32xf32> to vector<16x8xf32>
    %28 = vector.extract_strided_slice %13 {offsets = [0, 16], sizes = [16, 8], strides = [1, 1]} : vector<16x32xf32> to vector<16x8xf32>
    %29 = vector.extract_strided_slice %13 {offsets = [0, 24], sizes = [16, 8], strides = [1, 1]} : vector<16x32xf32> to vector<16x8xf32>
    %30 = vector.shape_cast %26 : vector<16x8xf32> to vector<1x16x8xf32>
    %31 = vector.shape_cast %27 : vector<16x8xf32> to vector<1x16x8xf32>
    %32 = vector.shape_cast %28 : vector<16x8xf32> to vector<1x16x8xf32>
    %33 = vector.shape_cast %29 : vector<16x8xf32> to vector<1x16x8xf32>
    %34 = tpu.concatenate %30, %31, %32, %33 in 0 : vector<1x16x8xf32>, vector<1x16x8xf32>, vector<1x16x8xf32>, vector<1x16x8xf32> -> vector<4x16x8xf32>
    %c0_18 = arith.constant 0 : index
    %c0_19 = arith.constant 0 : index
    %c0_20 = arith.constant 0 : index
    %c0_21 = arith.constant 0 : index
    %35 = vector.load %arg9[%c0_18, %c0_19, %c0_20, %c0_21] : memref<1x4x16x8xf32, #tpu.memory_space<vmem>>, vector<1x4x16x8xf32>
    %36 = vector.shape_cast %35 : vector<1x4x16x8xf32> to vector<4x16x8xf32>
    %37 = vector.shape_cast %34 : vector<4x16x8xf32> to vector<1x4x16x8xf32>
    tpu.vector_store %arg9[%c0_18, %c0_19, %c0_20, %c0_21], %37 {strides = array<i32>} : memref<1x4x16x8xf32, #tpu.memory_space<vmem>>, vector<1x4x16x8xf32>,
    return
  }
  func.func @transform_0(%arg0: i32, %arg1: i32) -> (i32, i32, i32) {
    %c0_i32 = arith.constant 0 : i32
    %c0_i32_0 = arith.constant 0 : i32
    return %arg0, %arg1, %c0_i32 : i32, i32, i32
  }
  func.func @transform_1(%arg0: i32, %arg1: i32) -> (i32, i32, i32) {
    %c0_i32 = arith.constant 0 : i32
    %c0_i32_0 = arith.constant 0 : i32
    return %arg0, %arg1, %c0_i32 : i32, i32, i32
  }
  func.func @transform_2(%arg0: i32, %arg1: i32) -> (i32, i32) {
    %c0_i32 = arith.constant 0 : i32
    %c0_i32_0 = arith.constant 0 : i32
    %c0_i32_1 = arith.constant 0 : i32
    return %c0_i32, %c0_i32_0 : i32, i32
  }
  func.func @transform_3(%arg0: i32, %arg1: i32) -> (i32, i32) {
    %c0_i32 = arith.constant 0 : i32
    %c0_i32_0 = arith.constant 0 : i32
    %c0_i32_1 = arith.constant 0 : i32
    return %c0_i32, %c0_i32_0 : i32, i32
  }
  func.func @transform_4(%arg0: i32, %arg1: i32) -> (i32, i32) {
    %c0_i32 = arith.constant 0 : i32
    %c0_i32_0 = arith.constant 0 : i32
    %c0_i32_1 = arith.constant 0 : i32
    return %c0_i32, %c0_i32_0 : i32, i32
  }
  func.func @transform_5(%arg0: i32, %arg1: i32) -> (i32, i32) {
    %c0_i32 = arith.constant 0 : i32
    %c0_i32_0 = arith.constant 0 : i32
    %c0_i32_1 = arith.constant 0 : i32
    return %c0_i32, %c0_i32_0 : i32, i32
  }
  func.func @transform_6(%arg0: i32, %arg1: i32) -> (i32, i32, i32, i32) {
    %c0_i32 = arith.constant 0 : i32
    %c0_i32_0 = arith.constant 0 : i32
    %c0_i32_1 = arith.constant 0 : i32
    return %arg0, %c0_i32, %arg1, %c0_i32_0 : i32, i32, i32, i32
  }
  func.func @transform_7(%arg0: i32, %arg1: i32) -> (i32, i32, i32, i32) {
    %c0_i32 = arith.constant 0 : i32
    %c0_i32_0 = arith.constant 0 : i32
    %c0_i32_1 = arith.constant 0 : i32
    return %arg0, %c0_i32, %arg1, %c0_i32_0 : i32, i32, i32, i32
  }
}

</mosaic_0001>

<bundles_post_ra>
// kernel: tpu_custom_call.1
= control target key start
LH: loop header
LB: loop body
LE: loop exit
PB: predicated region body
PF: predicated region fallthrough
CT: control target
= control target key end

     0   :  { %s1469_s0 = inlined_call_operand.hbm [shape: f32[2,16,32], index: 0, kind: input, shape index: {}]   ;;  %s1470_s1 = inlined_call_operand.hbm [shape: f32[2,16,32], index: 1, kind: input, shape index: {}]   ;;  %s1471_s2 = inlined_call_operand.hbm [shape: f32[32,32], index: 2, kind: input, shape index: {}]   ;;  %s1472_s3 = inlined_call_operand.vmem [shape: f32[1,32], index: 3, kind: input, shape index: {}]   ;;  %s1473_s4 = inlined_call_operand.hbm [shape: f32[32,32], index: 4, kind: input, shape index: {}]   ;;  %s1474_s5 = inlined_call_operand.vmem [shape: f32[1,32], index: 5, kind: input, shape index: {}]   ;;  %s1475_s6 = inlined_call_operand.vmem [shape: f32[2,4,16,8], index: 6, kind: output, shape index: {0}]   ;;  %s1476_s7 = inlined_call_operand.vmem [shape: f32[2,4,16,8], index: 7, kind: output, shape index: {1}]  }
   0x1   :  { %1482 = sst [smem:[#allocation13_spill]] %s1469_s0 }
   0x2   :  { %1483 = sst [smem:[#allocation14_spill]] %s1471_s2 }
   0x3   :  { %1484 = sst [smem:[#allocation15_spill]] %s1473_s4 }
   0x4   :  { %13 = vsyncpa [#allocation3], 0 }
   0x5   :  { %15 = vsyncpa [#allocation3 + $0x1], 0 }
   0x6   :  { %16 = vsyncpa [#allocation5], 0 }
   0x7   :  { %18 = vsyncpa [#allocation5 + $0x1], 0 }
   0x8   :  { %19 = vsyncpa [#allocation8], 0  ;;  %s1235_s24 = smov 0   ;;  %s1237_s25 = smov 0  }
   0x9   :  { %s1239_s26 = smov 0   ;;  %s1241_s27 = smov 0  }
   0xa   :  { %s1243_s28 = smov 0   ;;  %s1245_s29 = smov 0  }
   0xb LB: > { %s1477_s30 = sadd.s32 4294967295, %s1184_s29   ;;  %p59_p0 = scmp.ne.s32.totalorder %s1168_s25, %s1164_s24  ;;  %s1184_s29 = sphi %s1245_s29, %s25_s29   ;;  %s1180_s28 = sphi %s1243_s28, %s1501_s28   ;;  %s1176_s27 = sphi %s1241_s27, %s1500_s27   ;;  %s1172_s26 = sphi %s1239_s26, %s1499_s26   ;;  %s1168_s25 = sphi %s1237_s25, %s1498_s25   ;;  %s1164_s24 = sphi %s1235_s24, %s1497_s24  }
   0xc   : > { %p1267_p1 = scmp.eq.s32.totalorder %s1477_s30, 0  ;;  %p863_p2 = scmp.ge.s32.totalorder %s1184_s29, 1 }
   0xd   : > { %p238_p3 = scmp.lt.s32.totalorder %s1184_s29, 3  ;;  %s1186_s11 = smov [#allocation6]  }
   0xe   : > { %p1275_p4 = por %p1267_p1, %p59_p0  ;;  %s250_s12 = sshll.u32 %s1186_s11, 4  ;;  %s251_s12 = int_to_ptr.vmem [resolvable:$true] %s250_s12 }
   0xf   : > { %p1279_p5 = pnand %p863_p2, %p238_p3  ;;  %s1187_s14 = smov [#allocation7]  }
  0x10   : > { %s266_s15 = sshll.u32 %s1187_s14, 4  ;;  %s1025_s16 = scalar_lea.vmem %s251_s12, 512  ;;  %s267_s15 = int_to_ptr.vmem [resolvable:$true] %s266_s15 }
  0x11   : > { %p940_p6 = pneg %p1279_p5  ;;  %p1026_p9 = scmp.ne.s32.totalorder %s251_s12, %s1025_s16 }
  0x12   : > { %p1033_p12 = scmp.lt.s32.totalorder %s251_s12, %s251_s12  ;;  %p1034_p13 = scmp.lt.s32.totalorder %s1025_s16, %s1025_s16 }
  0x13   : > { %p1287_p7 = pnand %p940_p6, %p1267_p1 }
  0x14   : > { %p1035_p0 = por %p1034_p13, %p1033_p12 }
  0x15   : > { %p1016_p8 = pneg %p1287_p7 }
  0x17   : > { %p1028_p10 = pnand %p1026_p9, %p1016_p8 }
  0x19   : > { %p1029_p11 = pneg %p1028_p10 }
  0x1b   : > { %p1036_p2 = pnand %p1035_p0, %p1029_p11 }
  0x1d   : > { %1039 = shalt.err (!%p1036_p2)
}
  0x1e   : > { %s1478_s17 = smov 128   ;;  %s1480_s18 = smov 8  }
  0x1f   : > { %s1489_s2 = sld [smem:[#allocation14_spill]]  ;;  %s1051_s21 = scalar_lea.vmem %s267_s15, 512 }
  0x20   : > { %p1052_p3 = scmp.ne.s32.totalorder %s267_s15, %s1051_s21  ;;  %p1059_p10 = scmp.lt.s32.totalorder %s267_s15, %s267_s15 }
  0x21   : > { %p1060_p11 = scmp.lt.s32.totalorder %s1051_s21, %s1051_s21 }
  0x22   : > { %p1054_p6 = pnand %p1052_p3, %p1016_p8 }
  0x23   : > { %p1061_p12 = por %p1060_p11, %p1059_p10 }
  0x24   : > { %p1055_p9 = pneg %p1054_p6 }
  0x25   : > { %943 = dma.hbm_to_vmem [thread:$0]  (!%p1287_p7), %s1489_s2, 512, %s251_s12, [#allocation5], %s1478_s17, %s1478_s17, %s1480_s18  }
  0x26   : > { %p1062_p13 = pnand %p1061_p12, %p1055_p9 }
  0x28   : > { %1065 = shalt.err (!%p1062_p13)
}
  0x29   : > { %s1490_s4 = sld [smem:[#allocation15_spill]]  ;;  %s37_s24 = sadd.s32 1, %s1180_s28 }
  0x2a   : > { %s46_s11 = sadd.s32 1, %s1172_s26  ;;  %p39_p8 = scmp.ge.s32.totalorder %s37_s24, 2 }
  0x2b   : > { %p53_p0 = scmp.ne.s32.totalorder %s1172_s26, %s1168_s25  ;;  %p54_p2 = scmp.eq.s32.totalorder %s1184_s29, 0 }
  0x2c   : > { %p956_p3 = scmp.lt.s32.totalorder %s1184_s29, 2  ;;  %s1503_s24 = smov (%p39_p8, %s37_s24), 0 }
  0x2d   : > { %p55_p6 = por %p54_p2, %p53_p0  ;;  %s283_s12 = sand.u32 1, %s1172_s26  }
  0x2e   : > { %s41_s13 = ssub.s32 %s1180_s28, %s1503_s24  ;;  %s867_s14 = sshll.u32 %s283_s12, 4 }
  0x2f   : > { %946 = dma.hbm_to_vmem [thread:$0]  (!%p1287_p7), %s1490_s4, 512, %s267_s15, [#allocation8], %s1478_s17, %s1478_s17, %s1480_s18  }
  0x30   : > { %p44_p9 = scmp.eq.s32.totalorder %s41_s13, 0  ;;  %s890_s16 = sshll.u32 %s1180_s28, 8 }
  0x31   : > { %s1491_s0 = sld [smem:[#allocation13_spill]]  ;;  %s287_s22 = scalar_lea.vmem [#allocation2], %s867_s14 }
  0x32   : > { %s1328_s19 = scalar_select %p44_p9, %s1172_s26, %s46_s11  }
  0x33   : > { %s296_s23 = sshll.u32 %s287_s22, 4  ;;  %p1335_p7 = pnand %p956_p3, %p55_p6  ;;  %s297_s23 = int_to_ptr.vmem [resolvable:$true] %s296_s23 }
  0x34   : > { %s1342_s13 = scalar_lea.hbm %s1470_s1, %s890_s16  ;;  %s310_s11 = scalar_lea.vmem [#allocation4], %s867_s14 }
  0x35   : > { %s319_s2 = sshll.u32 %s310_s11, 4  ;;  %s284_s4 = scalar_lea.sflag [#allocation3], %s283_s12  ;;  %s320_s2 = int_to_ptr.vmem [resolvable:$true] %s319_s2 }
  0x36   : > { %p1068_p10 = pneg %p1335_p7  ;;  %s1079_s20 = scalar_lea.vmem %s297_s23, 256 }
  0x37   : > { %s295_s21 = scalar_lea.hbm %s1491_s0, %s890_s16  ;;  %p1080_p11 = scmp.ne.s32.totalorder %s297_s23, %s1079_s20 }
  0x38   : > { %s1190_s15 = smov [#allocation2]  }
  0x39   : > { %p1082_p12 = pnand %p1080_p11, %p1068_p10  ;;  %s1084_s22 = sshll.u32 %s1190_s15, 4  ;;  %s1085_s22 = int_to_ptr.vmem [resolvable:$false] %s1084_s22 }
  0x3a   : > { %s1086_s0 = scalar_lea.vmem %s1085_s22, 512  ;;  %p1087_p8 = scmp.lt.s32.totalorder %s297_s23, %s1085_s22 }
  0x3b   : > { %p1083_p13 = pneg %p1082_p12  ;;  %p1088_p0 = scmp.lt.s32.totalorder %s1086_s0, %s1079_s20 }
  0x3d   : > { %p1089_p2 = por %p1088_p0, %p1087_p8 }
  0x3f   : > { %p1090_p3 = pnand %p1089_p2, %p1083_p13 }
  0x41   : > { %1093 = shalt.err (!%p1090_p3)
}
  0x42   : > { %s1493_s17 = smov 8   ;;  %s1494_s18 = smov 128  }
  0x43   : > { %950 = dma.hbm_to_vmem [thread:$0]  (!%p1335_p7), %s295_s21, 256, %s297_s23, %s284_s4, %s1494_s18, %s1494_s18, %s1493_s17  }
  0x44   : > { %s306_s12 = sand.u32 1, %s1184_s29   ;;  %s1107_s16 = scalar_lea.vmem %s320_s2, 256 }
  0x45   : > { %s307_s14 = scalar_lea.sflag [#allocation5], %s306_s12  ;;  %p1108_p6 = scmp.ne.s32.totalorder %s320_s2, %s1107_s16 }
  0x46   : > { %s1191_s0 = smov [#allocation4]  }
  0x47   : > { %p1110_p9 = pnand %p1108_p6, %p1068_p10  ;;  %s1112_s11 = sshll.u32 %s1191_s0, 4  ;;  %s1113_s11 = int_to_ptr.vmem [resolvable:$false] %s1112_s11 }
  0x48   : > { %s1114_s20 = scalar_lea.vmem %s1113_s11, 512  ;;  %p1115_p12 = scmp.lt.s32.totalorder %s320_s2, %s1113_s11 }
  0x49   : > { %p1111_p11 = pneg %p1110_p9  ;;  %p1116_p13 = scmp.lt.s32.totalorder %s1114_s20, %s1107_s16 }
  0x4b   : > { %p1117_p8 = por %p1116_p13, %p1115_p12 }
  0x4d   : > { %p1118_p0 = pnand %p1117_p8, %p1111_p11 }
  0x4f   : > { %1121 = shalt.err (!%p1118_p0)
}
  0x50   : > { %953 = dma.hbm_to_vmem [thread:$0]  (!%p1335_p7), %s1342_s13, 256, %s320_s2, %s307_s14, %s1494_s18, %s1494_s18, %s1493_s17  }
  0x51   : > { %331 = sbr.rel (%p1279_p5) target bundleno = 435 (0x1b3), region = 44  ;;  %s333_s4 = sand.u32 (!%p1279_p5), 1, %s1168_s25  }
  0x52   : > { %s1367_s21 = sshll.u32 (!%p1279_p5), %s333_s4, 4  ;;  %s334_s23 = scalar_lea.sflag (!%p1279_p5), [#allocation3], %s333_s4 }
  0x53   : > { %s337_s15 = scalar_lea.vmem (!%p1279_p5), [#allocation2], %s1367_s21 }
  0x56   : > { %1147 = dma.done.wait (%p1275_p4), %s334_s23, 256  }
  0x57   : > { %1149 = vsyncadd (%p1275_p4), %s334_s23, 4294967040  ;;  %s1495_s30 = sadd.s32 4294967295, %s1184_s29   ;;  %s346_s13 = scalar_lea.vmem [#allocation4], %s1367_s21 }
  0x58   : > { %s342_s2 = sand.u32 1, %s1495_s30  }
  0x59   : > { %s343_s10 = scalar_lea.sflag [#allocation5], %s342_s2 }
  0x5a   : > { %1151 = dma.done.wait (%p1275_p4), %s343_s10, 256  }
  0x5b   : > { %1153 = vsyncadd (%p1275_p4), %s343_s10, 4294967040 }
  0x5c   : > { %1155 = dma.done.wait (%p1267_p1), [#allocation5], 512  }
  0x5d   : > { %1157 = vsyncadd (%p1267_p1), [#allocation5], 4294966784 }
  0x5e   : > { %1159 = dma.done.wait (%p1267_p1), [#allocation8], 512  }
  0x5f   : > { %1161 = vsyncadd (%p1267_p1), [#allocation8], 4294966784  ;;  %v432_v0 = vld [vmem:[#allocation6 + $0x18] sm:$0xff]  ;;  %v431_v1 = vld [vmem:[#allocation6 + $0x10] sm:$0xff]  ;;  %vm440_vm0 = vcmask 261120   ;;  %p406_p1 = scmp.lt.s32.totalorder %s1176_s27, 1 }
  0x60   : > { %906 = vmatprep.subr.mxu0 %v432_v0  ;;  %v525_v2 = vld [vmem:[#allocation7 + $0x18] sm:$0xff]  ;;  %v425_v3 = vld [vmem:[%s337_s15] sm:$0xff]  ;;  %v430_v4 = vld [vmem:[#allocation6 + $0x8] sm:$0xff]  ;;  %vm634_vm1 = vcmask 64512   ;;  %s1192_s20 = smov 112   ;;  %s1193_s4 = smov 120  }
  0x61   : > { %907 = vmatpush3.msra.mxu0 %v432_v0  ;;  %917 = vmatprep.subr.mxu1 %v525_v2  ;;  %v524_v5 = vld [vmem:[#allocation7 + $0x10] sm:$0xff]  ;;  %v429_v6 = vld [vmem:[#allocation6] sm:$0xff]  ;;  %v523_v7 = vld [vmem:[#allocation7 + $0x8] sm:$0xff]  ;;  %s1505_s27 = smov (!%p406_p1, %s1176_s27), 1  ;;  %s1194_s21 = smov 104  }
  0x62   : > { %908 = vmatprep.subr.mxu0 %v431_v1  ;;  %914 = vmatprep.mubr.msk.f32.mxu0 %vm440_vm0, %v425_v3  ;;  %v426_v8 = vld [vmem:[%s337_s15 + $0x8] sm:$0xff]  ;;  %v522_v9 = vld [vmem:[#allocation7] sm:$0xff]  ;;  %s892_s8 = sshll.u32 %s1505_s27, 6 }
  0x63   : > { %909 = vmatpush3.msra.mxu0 %v431_v1  ;;  %918 = vmatpush3.msra.mxu1 %v525_v2  ;;  %v427_v10 = vld [vmem:[%s346_s13] sm:$0xff]  ;;  %v428_v11 = vld [vmem:[%s346_s13 + $0x8] sm:$0xff]  ;;  %s1409_s12 = scalar_lea.vmem %s1475_s6, %s892_s8  ;;  %s1417_s11 = scalar_lea.vmem %s1476_s7, %s892_s8 }
  0x64   : > { %910 = vmatprep.subr.mxu0 %v430_v4  ;;  %919 = vmatprep.subr.mxu1 %v524_v5  ;;  %v882_v12 = vld [vmem:[%s1472_s3] ss:$0 sm:$0xff] }
  0x65   : > { %911 = vmatpush3.msra.mxu0 %v430_v4  ;;  %920 = vmatpush3.msra.mxu1 %v524_v5  ;;  %v885_v14 = vld [vmem:[%s1474_s5] ss:$0 sm:$0xff] }
  0x66   : > { %912 = vmatprep.subr.mxu0 %v429_v6  ;;  %921 = vmatprep.subr.mxu1 %v523_v7 }
  0x67   : > { %913 = vmatpush3.msra.mxu0 %v429_v6  ;;  %922 = vmatpush3.msra.mxu1 %v523_v7 }
  0x68   : > { %915 = vmatmul.mubr.msk.f32.vlgmr.msra.gmra.mxu0 %vm440_vm0, %v426_v8  ;;  %923 = vmatprep.subr.mxu1 %v522_v9 }
  0x69   : > { %924 = vmatpush3.msra.mxu1 %v522_v9  ;;  %925 = vmatprep.mubr.msk.f32.mxu1 %vm440_vm0, %v427_v10 }
  0x6a   : > { %926 = vmatmul.mubr.msk.f32.vlgmr.msra.gmra.mxu1 %vm440_vm0, %v428_v11 }
 0x128   : > { %v916_v13 = vpop.f32.mrf.mxu0 }
 0x129   : > { %v519_v15 = vadd.f32 %v916_v13, %v882_v12 }
 0x12a   : > { %v513_v16 = vpop.f32.mrf.mxu0  ;;  %v927_v17 = vpop.f32.mrf.mxu1 }
 0x12b   : > { %636 = vst.msk [vmem:[%s1409_s12 + $0x8] sm:$0xff] %vm634_vm1, %v519_v15  ;;  %v514_v18 = vadd.f32 %v882_v12, %v513_v16  ;;  %624 = vrot.lane.b32.xlu1 %v519_v15, %s1192_s20  ;;  %618 = vrot.lane.b32.xlu0 %v519_v15, %s1193_s4  ;;  %v611_v19 = vadd.f32 %v927_v17, %v885_v14 }
 0x12c   : > { %v605_v20 = vpop.f32.mrf.mxu1 }
 0x12d   : > { %635 = vst.msk [vmem:[%s1409_s12] sm:$0xff] %vm634_vm1, %v514_v18  ;;  %664 = vst.msk [vmem:[%s1417_s11 + $0x8] sm:$0xff] %vm634_vm1, %v611_v19  ;;  %v606_v21 = vadd.f32 %v885_v14, %v605_v20 }
 0x12f   : > { %630 = vrot.lane.b32.xlu1 %v519_v15, %s1194_s21  ;;  %616 = vrot.lane.b32.xlu0 %v514_v18, %s1193_s4  ;;  %663 = vst.msk [vmem:[%s1417_s11] sm:$0xff] %vm634_vm1, %v606_v21 }
 0x133   : > { %647 = vrot.lane.b32.xlu1 %v611_v19, %s1193_s4  ;;  %628 = vrot.lane.b32.xlu0 %v514_v18, %s1194_s21 }
 0x137   : > { %653 = vrot.lane.b32.xlu1 %v611_v19, %s1192_s20  ;;  %645 = vrot.lane.b32.xlu0 %v606_v21, %s1193_s4 }
 0x13b   : > { %622 = vrot.lane.b32.xlu1 %v514_v18, %s1192_s20  ;;  %651 = vrot.lane.b32.xlu0 %v606_v21, %s1192_s20 }
 0x13f   : > { %659 = vrot.lane.b32.xlu1 %v611_v19, %s1194_s21  ;;  %657 = vrot.lane.b32.xlu0 %v606_v21, %s1194_s21 }
 0x19d   : > { %v625_v22 = vpop.permute.xlu1 %624  ;;  %v619_v23 = vpop.permute.xlu0 %618 }
 0x19e   : > { %640 = vst.msk [vmem:[%s1409_s12 + $0x28] sm:$0xff] %vm634_vm1, %v625_v22  ;;  %638 = vst.msk [vmem:[%s1409_s12 + $0x18] sm:$0xff] %vm634_vm1, %v619_v23 }
 0x1a1   : > { %v631_v24 = vpop.permute.xlu1 %630  ;;  %v617_v25 = vpop.permute.xlu0 %616 }
 0x1a2   : > { %642 = vst.msk [vmem:[%s1409_s12 + $0x38] sm:$0xff] %vm634_vm1, %v631_v24  ;;  %637 = vst.msk [vmem:[%s1409_s12 + $0x10] sm:$0xff] %vm634_vm1, %v617_v25 }
 0x1a5   : > { %v648_v26 = vpop.permute.xlu1 %647  ;;  %v629_v27 = vpop.permute.xlu0 %628 }
 0x1a6   : > { %666 = vst.msk [vmem:[%s1417_s11 + $0x18] sm:$0xff] %vm634_vm1, %v648_v26  ;;  %641 = vst.msk [vmem:[%s1409_s12 + $0x30] sm:$0xff] %vm634_vm1, %v629_v27 }
 0x1a9   : > { %v654_v28 = vpop.permute.xlu1 %653  ;;  %v646_v29 = vpop.permute.xlu0 %645 }
 0x1aa   : > { %668 = vst.msk [vmem:[%s1417_s11 + $0x28] sm:$0xff] %vm634_vm1, %v654_v28  ;;  %665 = vst.msk [vmem:[%s1417_s11 + $0x10] sm:$0xff] %vm634_vm1, %v646_v29 }
 0x1ad   : > { %v623_v30 = vpop.permute.xlu1 %622  ;;  %v652_v31 = vpop.permute.xlu0 %651 }
 0x1ae   : > { %639 = vst.msk [vmem:[%s1409_s12 + $0x20] sm:$0xff] %vm634_vm1, %v623_v30  ;;  %667 = vst.msk [vmem:[%s1417_s11 + $0x20] sm:$0xff] %vm634_vm1, %v652_v31 }
 0x1b1   : > { %v660_v32 = vpop.permute.xlu1 %659  ;;  %v658_v33 = vpop.permute.xlu0 %657 }
 0x1b2   : > { %670 = vst.msk [vmem:[%s1417_s11 + $0x38] sm:$0xff] %vm634_vm1, %v660_v32  ;;  %669 = vst.msk [vmem:[%s1417_s11 + $0x30] sm:$0xff] %vm634_vm1, %v658_v33 }
 0x1b3 PF: > { %s25_s29 = sadd.s32 1, %s1184_s29   ;;  %s1496_s23 = smov %s1503_s24 }
 0x1b4   : > { %p22_p4 = scmp.ge.s32.totalorder %s25_s29, 4   ;;  %s1497_s24 = smov %s1168_s25 }
 0x1b5   : > { %s1498_s25 = smov %s1172_s26  ;;  %s1499_s26 = smov %s1328_s19 }
 0x1b6   : > { %s1500_s27 = smov %s1180_s28  ;;  %s1501_s28 = smov %s1496_s23 }
 0x1b7   :  { %24 = sbr.rel (!%p22_p4) target bundleno = 11 (0xb), region = 117 }
 0x1bc   :  { %726 = vsyncpa [#allocation3], 1 }
 0x1bd   :  { %728 = vsyncpa [#allocation3 + $0x1], 1 }
 0x1be   :  { %729 = vsyncpa [#allocation5], 1 }
 0x1bf   :  { %731 = vsyncpa [#allocation5 + $0x1], 1 }
 0x1c0   :  { %732 = vsyncpa [#allocation8], 1 }

// kernel: tpu_custom_call.1
= control target key start
LH: loop header
LB: loop body
LE: loop exit
PB: predicated region body
PF: predicated region fallthrough
CT: control target
= control target key end

     0   :  { %s1469_s0 = inlined_call_operand.hbm [shape: f32[2,16,32], index: 0, kind: input, shape index: {}]   ;;  %s1470_s1 = inlined_call_operand.hbm [shape: f32[2,16,32], index: 1, kind: input, shape index: {}]   ;;  %s1471_s2 = inlined_call_operand.hbm [shape: f32[32,32], index: 2, kind: input, shape index: {}]   ;;  %s1472_s3 = inlined_call_operand.vmem [shape: f32[1,32], index: 3, kind: input, shape index: {}]   ;;  %s1473_s4 = inlined_call_operand.hbm [shape: f32[32,32], index: 4, kind: input, shape index: {}]   ;;  %s1474_s5 = inlined_call_operand.vmem [shape: f32[1,32], index: 5, kind: input, shape index: {}]   ;;  %s1475_s6 = inlined_call_operand.vmem [shape: f32[2,4,16,8], index: 6, kind: output, shape index: {0}]   ;;  %s1476_s7 = inlined_call_operand.vmem [shape: f32[2,4,16,8], index: 7, kind: output, shape index: {1}]  }
   0x1   :  { %1482 = sst [smem:[#allocation13_spill]] %s1469_s0 }
   0x2   :  { %1483 = sst [smem:[#allocation14_spill]] %s1471_s2 }
   0x3   :  { %1484 = sst [smem:[#allocation15_spill]] %s1473_s4 }
   0x4   :  { %13 = vsyncpa [#allocation3], 0 }
   0x5   :  { %15 = vsyncpa [#allocation3 + $0x1], 0 }
   0x6   :  { %16 = vsyncpa [#allocation5], 0 }
   0x7   :  { %18 = vsyncpa [#allocation5 + $0x1], 0 }
   0x8   :  { %19 = vsyncpa [#allocation8], 0  ;;  %s1235_s24 = smov 0   ;;  %s1237_s25 = smov 0  }
   0x9   :  { %s1239_s26 = smov 0   ;;  %s1241_s27 = smov 0  }
   0xa   :  { %s1243_s28 = smov 0   ;;  %s1245_s29 = smov 0  }
   0xb LB: > { %s1477_s30 = sadd.s32 4294967295, %s1184_s29   ;;  %p59_p0 = scmp.ne.s32.totalorder %s1168_s25, %s1164_s24  ;;  %s1184_s29 = sphi %s1245_s29, %s25_s29   ;;  %s1180_s28 = sphi %s1243_s28, %s1501_s28   ;;  %s1176_s27 = sphi %s1241_s27, %s1500_s27   ;;  %s1172_s26 = sphi %s1239_s26, %s1499_s26   ;;  %s1168_s25 = sphi %s1237_s25, %s1498_s25   ;;  %s1164_s24 = sphi %s1235_s24, %s1497_s24  }
   0xc   : > { %p1267_p1 = scmp.eq.s32.totalorder %s1477_s30, 0  ;;  %p863_p2 = scmp.ge.s32.totalorder %s1184_s29, 1 }
   0xd   : > { %p238_p3 = scmp.lt.s32.totalorder %s1184_s29, 3  ;;  %s1186_s11 = smov [#allocation6]  }
   0xe   : > { %p1275_p4 = por %p1267_p1, %p59_p0  ;;  %s250_s12 = sshll.u32 %s1186_s11, 4  ;;  %s251_s12 = int_to_ptr.vmem [resolvable:$true] %s250_s12 }
   0xf   : > { %p1279_p5 = pnand %p863_p2, %p238_p3  ;;  %s1187_s14 = smov [#allocation7]  }
  0x10   : > { %s266_s15 = sshll.u32 %s1187_s14, 4  ;;  %s1025_s16 = scalar_lea.vmem %s251_s12, 512  ;;  %s267_s15 = int_to_ptr.vmem [resolvable:$true] %s266_s15 }
  0x11   : > { %p940_p6 = pneg %p1279_p5  ;;  %p1026_p9 = scmp.ne.s32.totalorder %s251_s12, %s1025_s16 }
  0x12   : > { %p1033_p12 = scmp.lt.s32.totalorder %s251_s12, %s251_s12  ;;  %p1034_p13 = scmp.lt.s32.totalorder %s1025_s16, %s1025_s16 }
  0x13   : > { %p1287_p7 = pnand %p940_p6, %p1267_p1 }
  0x14   : > { %p1035_p0 = por %p1034_p13, %p1033_p12 }
  0x15   : > { %p1016_p8 = pneg %p1287_p7 }
  0x17   : > { %p1028_p10 = pnand %p1026_p9, %p1016_p8 }
  0x19   : > { %p1029_p11 = pneg %p1028_p10 }
  0x1b   : > { %p1036_p2 = pnand %p1035_p0, %p1029_p11 }
  0x1d   : > { %1039 = shalt.err (!%p1036_p2)
}
  0x1e   : > { %s1478_s17 = smov 128   ;;  %s1480_s18 = smov 8  }
  0x1f   : > { %s1489_s2 = sld [smem:[#allocation14_spill]]  ;;  %s1051_s21 = scalar_lea.vmem %s267_s15, 512 }
  0x20   : > { %p1052_p3 = scmp.ne.s32.totalorder %s267_s15, %s1051_s21  ;;  %p1059_p10 = scmp.lt.s32.totalorder %s267_s15, %s267_s15 }
  0x21   : > { %p1060_p11 = scmp.lt.s32.totalorder %s1051_s21, %s1051_s21 }
  0x22   : > { %p1054_p6 = pnand %p1052_p3, %p1016_p8 }
  0x23   : > { %p1061_p12 = por %p1060_p11, %p1059_p10 }
  0x24   : > { %p1055_p9 = pneg %p1054_p6 }
  0x25   : > { %943 = dma.hbm_to_vmem [thread:$0]  (!%p1287_p7), %s1489_s2, 512, %s251_s12, [#allocation5], %s1478_s17, %s1478_s17, %s1480_s18  }
  0x26   : > { %p1062_p13 = pnand %p1061_p12, %p1055_p9 }
  0x28   : > { %1065 = shalt.err (!%p1062_p13)
}
  0x29   : > { %s1490_s4 = sld [smem:[#allocation15_spill]]  ;;  %s37_s24 = sadd.s32 1, %s1180_s28 }
  0x2a   : > { %s46_s11 = sadd.s32 1, %s1172_s26  ;;  %p39_p8 = scmp.ge.s32.totalorder %s37_s24, 2 }
  0x2b   : > { %p53_p0 = scmp.ne.s32.totalorder %s1172_s26, %s1168_s25  ;;  %p54_p2 = scmp.eq.s32.totalorder %s1184_s29, 0 }
  0x2c   : > { %p956_p3 = scmp.lt.s32.totalorder %s1184_s29, 2  ;;  %s1503_s24 = smov (%p39_p8, %s37_s24), 0 }
  0x2d   : > { %p55_p6 = por %p54_p2, %p53_p0  ;;  %s283_s12 = sand.u32 1, %s1172_s26  }
  0x2e   : > { %s41_s13 = ssub.s32 %s1180_s28, %s1503_s24  ;;  %s867_s14 = sshll.u32 %s283_s12, 4 }
  0x2f   : > { %946 = dma.hbm_to_vmem [thread:$0]  (!%p1287_p7), %s1490_s4, 512, %s267_s15, [#allocation8], %s1478_s17, %s1478_s17, %s1480_s18  }
  0x30   : > { %p44_p9 = scmp.eq.s32.totalorder %s41_s13, 0  ;;  %s890_s16 = sshll.u32 %s1180_s28, 8 }
  0x31   : > { %s1491_s0 = sld [smem:[#allocation13_spill]]  ;;  %s287_s22 = scalar_lea.vmem [#allocation2], %s867_s14 }
  0x32   : > { %s1328_s19 = scalar_select %p44_p9, %s1172_s26, %s46_s11  }
  0x33   : > { %s296_s23 = sshll.u32 %s287_s22, 4  ;;  %p1335_p7 = pnand %p956_p3, %p55_p6  ;;  %s297_s23 = int_to_ptr.vmem [resolvable:$true] %s296_s23 }
  0x34   : > { %s1342_s13 = scalar_lea.hbm %s1470_s1, %s890_s16  ;;  %s310_s11 = scalar_lea.vmem [#allocation4], %s867_s14 }
  0x35   : > { %s319_s2 = sshll.u32 %s310_s11, 4  ;;  %s284_s4 = scalar_lea.sflag [#allocation3], %s283_s12  ;;  %s320_s2 = int_to_ptr.vmem [resolvable:$true] %s319_s2 }
  0x36   : > { %p1068_p10 = pneg %p1335_p7  ;;  %s1079_s20 = scalar_lea.vmem %s297_s23, 256 }
  0x37   : > { %s295_s21 = scalar_lea.hbm %s1491_s0, %s890_s16  ;;  %p1080_p11 = scmp.ne.s32.totalorder %s297_s23, %s1079_s20 }
  0x38   : > { %s1190_s15 = smov [#allocation2]  }
  0x39   : > { %p1082_p12 = pnand %p1080_p11, %p1068_p10  ;;  %s1084_s22 = sshll.u32 %s1190_s15, 4  ;;  %s1085_s22 = int_to_ptr.vmem [resolvable:$false] %s1084_s22 }
  0x3a   : > { %s1086_s0 = scalar_lea.vmem %s1085_s22, 512  ;;  %p1087_p8 = scmp.lt.s32.totalorder %s297_s23, %s1085_s22 }
  0x3b   : > { %p1083_p13 = pneg %p1082_p12  ;;  %p1088_p0 = scmp.lt.s32.totalorder %s1086_s0, %s1079_s20 }
  0x3d   : > { %p1089_p2 = por %p1088_p0, %p1087_p8 }
  0x3f   : > { %p1090_p3 = pnand %p1089_p2, %p1083_p13 }
  0x41   : > { %1093 = shalt.err (!%p1090_p3)
}
  0x42   : > { %s1493_s17 = smov 8   ;;  %s1494_s18 = smov 128  }
  0x43   : > { %950 = dma.hbm_to_vmem [thread:$0]  (!%p1335_p7), %s295_s21, 256, %s297_s23, %s284_s4, %s1494_s18, %s1494_s18, %s1493_s17  }
  0x44   : > { %s306_s12 = sand.u32 1, %s1184_s29   ;;  %s1107_s16 = scalar_lea.vmem %s320_s2, 256 }
  0x45   : > { %s307_s14 = scalar_lea.sflag [#allocation5], %s306_s12  ;;  %p1108_p6 = scmp.ne.s32.totalorder %s320_s2, %s1107_s16 }
  0x46   : > { %s1191_s0 = smov [#allocation4]  }
  0x47   : > { %p1110_p9 = pnand %p1108_p6, %p1068_p10  ;;  %s1112_s11 = sshll.u32 %s1191_s0, 4  ;;  %s1113_s11 = int_to_ptr.vmem [resolvable:$false] %s1112_s11 }
  0x48   : > { %s1114_s20 = scalar_lea.vmem %s1113_s11, 512  ;;  %p1115_p12 = scmp.lt.s32.totalorder %s320_s2, %s1113_s11 }
  0x49   : > { %p1111_p11 = pneg %p1110_p9  ;;  %p1116_p13 = scmp.lt.s32.totalorder %s1114_s20, %s1107_s16 }
  0x4b   : > { %p1117_p8 = por %p1116_p13, %p1115_p12 }
  0x4d   : > { %p1118_p0 = pnand %p1117_p8, %p1111_p11 }
  0x4f   : > { %1121 = shalt.err (!%p1118_p0)
}
  0x50   : > { %953 = dma.hbm_to_vmem [thread:$0]  (!%p1335_p7), %s1342_s13, 256, %s320_s2, %s307_s14, %s1494_s18, %s1494_s18, %s1493_s17  }
  0x51   : > { %331 = sbr.rel (%p1279_p5) target bundleno = 435 (0x1b3), region = 44  ;;  %s333_s4 = sand.u32 (!%p1279_p5), 1, %s1168_s25  }
  0x52   : > { %s1367_s21 = sshll.u32 (!%p1279_p5), %s333_s4, 4  ;;  %s334_s23 = scalar_lea.sflag (!%p1279_p5), [#allocation3], %s333_s4 }
  0x53   : > { %s337_s15 = scalar_lea.vmem (!%p1279_p5), [#allocation2], %s1367_s21 }
  0x56   : > { %1147 = dma.done.wait (%p1275_p4), %s334_s23, 256  }
  0x57   : > { %1149 = vsyncadd (%p1275_p4), %s334_s23, 4294967040  ;;  %s1495_s30 = sadd.s32 4294967295, %s1184_s29   ;;  %s346_s13 = scalar_lea.vmem [#allocation4], %s1367_s21 }
  0x58   : > { %s342_s2 = sand.u32 1, %s1495_s30  }
  0x59   : > { %s343_s10 = scalar_lea.sflag [#allocation5], %s342_s2 }
  0x5a   : > { %1151 = dma.done.wait (%p1275_p4), %s343_s10, 256  }
  0x5b   : > { %1153 = vsyncadd (%p1275_p4), %s343_s10, 4294967040 }
  0x5c   : > { %1155 = dma.done.wait (%p1267_p1), [#allocation5], 512  }
  0x5d   : > { %1157 = vsyncadd (%p1267_p1), [#allocation5], 4294966784 }
  0x5e   : > { %1159 = dma.done.wait (%p1267_p1), [#allocation8], 512  }
  0x5f   : > { %1161 = vsyncadd (%p1267_p1), [#allocation8], 4294966784  ;;  %v432_v0 = vld [vmem:[#allocation6 + $0x18] sm:$0xff]  ;;  %v431_v1 = vld [vmem:[#allocation6 + $0x10] sm:$0xff]  ;;  %vm440_vm0 = vcmask 261120   ;;  %p406_p1 = scmp.lt.s32.totalorder %s1176_s27, 1 }
  0x60   : > { %906 = vmatprep.subr.mxu0 %v432_v0  ;;  %v525_v2 = vld [vmem:[#allocation7 + $0x18] sm:$0xff]  ;;  %v425_v3 = vld [vmem:[%s337_s15] sm:$0xff]  ;;  %v430_v4 = vld [vmem:[#allocation6 + $0x8] sm:$0xff]  ;;  %vm634_vm1 = vcmask 64512   ;;  %s1192_s20 = smov 112   ;;  %s1193_s4 = smov 120  }
  0x61   : > { %907 = vmatpush3.msra.mxu0 %v432_v0  ;;  %917 = vmatprep.subr.mxu1 %v525_v2  ;;  %v524_v5 = vld [vmem:[#allocation7 + $0x10] sm:$0xff]  ;;  %v429_v6 = vld [vmem:[#allocation6] sm:$0xff]  ;;  %v523_v7 = vld [vmem:[#allocation7 + $0x8] sm:$0xff]  ;;  %s1505_s27 = smov (!%p406_p1, %s1176_s27), 1  ;;  %s1194_s21 = smov 104  }
  0x62   : > { %908 = vmatprep.subr.mxu0 %v431_v1  ;;  %914 = vmatprep.mubr.msk.f32.mxu0 %vm440_vm0, %v425_v3  ;;  %v426_v8 = vld [vmem:[%s337_s15 + $0x8] sm:$0xff]  ;;  %v522_v9 = vld [vmem:[#allocation7] sm:$0xff]  ;;  %s892_s8 = sshll.u32 %s1505_s27, 6 }
  0x63   : > { %909 = vmatpush3.msra.mxu0 %v431_v1  ;;  %918 = vmatpush3.msra.mxu1 %v525_v2  ;;  %v427_v10 = vld [vmem:[%s346_s13] sm:$0xff]  ;;  %v428_v11 = vld [vmem:[%s346_s13 + $0x8] sm:$0xff]  ;;  %s1409_s12 = scalar_lea.vmem %s1475_s6, %s892_s8  ;;  %s1417_s11 = scalar_lea.vmem %s1476_s7, %s892_s8 }
  0x64   : > { %910 = vmatprep.subr.mxu0 %v430_v4  ;;  %919 = vmatprep.subr.mxu1 %v524_v5  ;;  %v882_v12 = vld [vmem:[%s1472_s3] ss:$0 sm:$0xff] }
  0x65   : > { %911 = vmatpush3.msra.mxu0 %v430_v4  ;;  %920 = vmatpush3.msra.mxu1 %v524_v5  ;;  %v885_v14 = vld [vmem:[%s1474_s5] ss:$0 sm:$0xff] }
  0x66   : > { %912 = vmatprep.subr.mxu0 %v429_v6  ;;  %921 = vmatprep.subr.mxu1 %v523_v7 }
  0x67   : > { %913 = vmatpush3.msra.mxu0 %v429_v6  ;;  %922 = vmatpush3.msra.mxu1 %v523_v7 }
  0x68   : > { %915 = vmatmul.mubr.msk.f32.vlgmr.msra.gmra.mxu0 %vm440_vm0, %v426_v8  ;;  %923 = vmatprep.subr.mxu1 %v522_v9 }
  0x69   : > { %924 = vmatpush3.msra.mxu1 %v522_v9  ;;  %925 = vmatprep.mubr.msk.f32.mxu1 %vm440_vm0, %v427_v10 }
  0x6a   : > { %926 = vmatmul.mubr.msk.f32.vlgmr.msra.gmra.mxu1 %vm440_vm0, %v428_v11 }
 0x128   : > { %v916_v13 = vpop.f32.mrf.mxu0 }
 0x129   : > { %v519_v15 = vadd.f32 %v916_v13, %v882_v12 }
 0x12a   : > { %v513_v16 = vpop.f32.mrf.mxu0  ;;  %v927_v17 = vpop.f32.mrf.mxu1 }
 0x12b   : > { %636 = vst.msk [vmem:[%s1409_s12 + $0x8] sm:$0xff] %vm634_vm1, %v519_v15  ;;  %v514_v18 = vadd.f32 %v882_v12, %v513_v16  ;;  %624 = vrot.lane.b32.xlu1 %v519_v15, %s1192_s20  ;;  %618 = vrot.lane.b32.xlu0 %v519_v15, %s1193_s4  ;;  %v611_v19 = vadd.f32 %v927_v17, %v885_v14 }
 0x12c   : > { %v605_v20 = vpop.f32.mrf.mxu1 }
 0x12d   : > { %635 = vst.msk [vmem:[%s1409_s12] sm:$0xff] %vm634_vm1, %v514_v18  ;;  %664 = vst.msk [vmem:[%s1417_s11 + $0x8] sm:$0xff] %vm634_vm1, %v611_v19  ;;  %v606_v21 = vadd.f32 %v885_v14, %v605_v20 }
 0x12f   : > { %630 = vrot.lane.b32.xlu1 %v519_v15, %s1194_s21  ;;  %616 = vrot.lane.b32.xlu0 %v514_v18, %s1193_s4  ;;  %663 = vst.msk [vmem:[%s1417_s11] sm:$0xff] %vm634_vm1, %v606_v21 }
 0x133   : > { %647 = vrot.lane.b32.xlu1 %v611_v19, %s1193_s4  ;;  %628 = vrot.lane.b32.xlu0 %v514_v18, %s1194_s21 }
 0x137   : > { %653 = vrot.lane.b32.xlu1 %v611_v19, %s1192_s20  ;;  %645 = vrot.lane.b32.xlu0 %v606_v21, %s1193_s4 }
 0x13b   : > { %622 = vrot.lane.b32.xlu1 %v514_v18, %s1192_s20  ;;  %651 = vrot.lane.b32.xlu0 %v606_v21, %s1192_s20 }
 0x13f   : > { %659 = vrot.lane.b32.xlu1 %v611_v19, %s1194_s21  ;;  %657 = vrot.lane.b32.xlu0 %v606_v21, %s1194_s21 }
 0x19d   : > { %v625_v22 = vpop.permute.xlu1 %624  ;;  %v619_v23 = vpop.permute.xlu0 %618 }
 0x19e   : > { %640 = vst.msk [vmem:[%s1409_s12 + $0x28] sm:$0xff] %vm634_vm1, %v625_v22  ;;  %638 = vst.msk [vmem:[%s1409_s12 + $0x18] sm:$0xff] %vm634_vm1, %v619_v23 }
 0x1a1   : > { %v631_v24 = vpop.permute.xlu1 %630  ;;  %v617_v25 = vpop.permute.xlu0 %616 }
 0x1a2   : > { %642 = vst.msk [vmem:[%s1409_s12 + $0x38] sm:$0xff] %vm634_vm1, %v631_v24  ;;  %637 = vst.msk [vmem:[%s1409_s12 + $0x10] sm:$0xff] %vm634_vm1, %v617_v25 }
 0x1a5   : > { %v648_v26 = vpop.permute.xlu1 %647  ;;  %v629_v27 = vpop.permute.xlu0 %628 }
 0x1a6   : > { %666 = vst.msk [vmem:[%s1417_s11 + $0x18] sm:$0xff] %vm634_vm1, %v648_v26  ;;  %641 = vst.msk [vmem:[%s1409_s12 + $0x30] sm:$0xff] %vm634_vm1, %v629_v27 }
 0x1a9   : > { %v654_v28 = vpop.permute.xlu1 %653  ;;  %v646_v29 = vpop.permute.xlu0 %645 }
 0x1aa   : > { %668 = vst.msk [vmem:[%s1417_s11 + $0x28] sm:$0xff] %vm634_vm1, %v654_v28  ;;  %665 = vst.msk [vmem:[%s1417_s11 + $0x10] sm:$0xff] %vm634_vm1, %v646_v29 }
 0x1ad   : > { %v623_v30 = vpop.permute.xlu1 %622  ;;  %v652_v31 = vpop.permute.xlu0 %651 }
 0x1ae   : > { %639 = vst.msk [vmem:[%s1409_s12 + $0x20] sm:$0xff] %vm634_vm1, %v623_v30  ;;  %667 = vst.msk [vmem:[%s1417_s11 + $0x20] sm:$0xff] %vm634_vm1, %v652_v31 }
 0x1b1   : > { %v660_v32 = vpop.permute.xlu1 %659  ;;  %v658_v33 = vpop.permute.xlu0 %657 }
 0x1b2   : > { %670 = vst.msk [vmem:[%s1417_s11 + $0x38] sm:$0xff] %vm634_vm1, %v660_v32  ;;  %669 = vst.msk [vmem:[%s1417_s11 + $0x30] sm:$0xff] %vm634_vm1, %v658_v33 }
 0x1b3 PF: > { %s25_s29 = sadd.s32 1, %s1184_s29   ;;  %s1496_s23 = smov %s1503_s24 }
 0x1b4   : > { %p22_p4 = scmp.ge.s32.totalorder %s25_s29, 4   ;;  %s1497_s24 = smov %s1168_s25 }
 0x1b5   : > { %s1498_s25 = smov %s1172_s26  ;;  %s1499_s26 = smov %s1328_s19 }
 0x1b6   : > { %s1500_s27 = smov %s1180_s28  ;;  %s1501_s28 = smov %s1496_s23 }
 0x1b7   :  { %24 = sbr.rel (!%p22_p4) target bundleno = 11 (0xb), region = 117 }
 0x1bc   :  { %726 = vsyncpa [#allocation3], 1 }
 0x1bd   :  { %728 = vsyncpa [#allocation3 + $0x1], 1 }
 0x1be   :  { %729 = vsyncpa [#allocation5], 1 }
 0x1bf   :  { %731 = vsyncpa [#allocation5 + $0x1], 1 }
 0x1c0   :  { %732 = vsyncpa [#allocation8], 1 }

</bundles_post_ra>
